<compile_context>
chip_gen: v5e
topology: v5e:2x2
jax: 0.10.0
libtpu: 0.0.40
codegen_flags: <defaults>
</compile_context>

<pallas_src>
import functools

import jax
import jax.numpy as jnp
from jax.experimental import pallas as pl
from jax.experimental.pallas import tpu as pltpu


def attention_kernel(x_ref, w1_ref, b1_ref, w2_ref, b2_ref, o_ref, *,
                     rows_per_graph, real_rows):
    """One grid step: `bg` lane-folded attention groups, row-stacked.

    x_ref:  (bg*Np, F*A1)  activations (f32), F instances folded along lanes
    w1_ref: (F*A1, F*A2)   block-diagonal layer-1 weight
    b1_ref: (1,    F*A2)   layer-1 bias, tiled F times
    w2_ref: (F*A2, F*A1)   block-diagonal layer-2 weight
    b2_ref: (1,    F*A1)   layer-2 bias, tiled F times
    o_ref:  (bg*Np, F*A1)  output
    """
    x = x_ref[...]                                   # (bg*Np, F*A1)

    # Layer 1: Linear + ReLU (f32 MXU operands, f32 accumulation).
    h = jnp.dot(x, w1_ref[...], preferred_element_type=jnp.float32)
    h = jnp.maximum(h + b1_ref[...], 0.0)            # (bg*Np, F*A2)

    # Layer 2: Linear.
    s = jnp.dot(h, w2_ref[...], preferred_element_type=jnp.float32)
    s = s + b2_ref[...]                              # (bg*Np, F*A1)

    rows, width = s.shape
    bg = rows // rows_per_graph

    # Per-instance softmax over the capsule axis (dim=0 of each instance).
    # The reshape only regroups sublanes in multiples of the native tile.
    s3 = s.reshape(bg, rows_per_graph, width)
    x3 = x.reshape(bg, rows_per_graph, width)

    if real_rows != rows_per_graph:
        # Capsule axis was padded to a sublane multiple: mask padded rows out
        # of the softmax (max and sum) with a large negative score.
        row = jax.lax.broadcasted_iota(jnp.int32, s3.shape, 1)
        s3 = jnp.where(row < real_rows, s3, -1e30)

    m = jnp.max(s3, axis=1, keepdims=True)           # (bg, 1, width)
    e = jnp.exp(s3 - m)                              # (bg, Np, width)
    inv = pl.reciprocal(jnp.sum(e, axis=1, keepdims=True), approx=True)  # EUP

    # Fused: out = x * softmax(s) with no materialized `att` temporary.
    o3 = x3 * e * inv
    o_ref[...] = o3.reshape(rows, width).astype(o_ref.dtype)


def attention_forward(x, w1, b1, w2, b2, *, lane_fold=None,
                      target_rows_per_block=1024):
    """Batched CapsGNN attention.

    x:  (B, N, A1)  B independent instances, softmax taken over N within each.
    w1: (A1, A2), b1: (1, A2), w2: (A2, A1), b2: (1, A1)  (weights pre-transposed).
    Returns (B, N, A1).
    """
    B, N, A1 = x.shape
    A2 = w1.shape[1]
    dtype = x.dtype

    # Lane fold factor: pack F instances along the lane axis so blocks are
    # lane-dense (F*A1 >= 128).  lane_fold=8 is also fine on v6e/v7x.
    if lane_fold is None:
        lane_fold = max(1, -(-128 // A1)) if A1 < 128 else 1
    F = int(lane_fold)

    # --- Pad the capsule axis to a sublane multiple (masked in-kernel). -----
    Np = ((N + 7) // 8) * 8
    if Np != N:
        x = jnp.pad(x, ((0, 0), (0, Np - N), (0, 0)))

    # --- Pad batch to a multiple of the lane-fold factor. -------------------
    Bp = ((B + F - 1) // F) * F
    if Bp != B:
        x = jnp.pad(x, ((0, Bp - B), (0, 0), (0, 0)))
    num_groups = Bp // F

    # --- Choose rows-per-block: big enough to amortize grid-step overhead,
    # --- but keep >= 2 grid steps when possible (v7x dual-TC sharding). -----
    bg_target = max(1, target_rows_per_block // Np)
    bg = max(1, min(bg_target, pl.cdiv(num_groups, 2)))
    groups_pad = pl.cdiv(num_groups, bg) * bg
    if groups_pad != num_groups:
        x = jnp.pad(x, ((0, (groups_pad - num_groups) * F), (0, 0), (0, 0)))
        num_groups = groups_pad

    width = F * A1
    hidden = F * A2

    # Lane fold: (G, F, Np, A1) -> (G, Np, F, A1) -> (G*Np, F*A1).
    x_fold = (x.reshape(num_groups, F, Np, A1)
               .transpose(0, 2, 1, 3)
               .reshape(num_groups * Np, width))

    # Block-diagonal weights (built once; a few tens of KiB resident in VMEM).
    eye_f = jnp.eye(F, dtype=w1.dtype)
    w1_bd = jnp.kron(eye_f, w1)          # (F*A1, F*A2)
    w2_bd = jnp.kron(eye_f, w2)          # (F*A2, F*A1)
    b1_bd = jnp.tile(b1, (1, F))         # (1, F*A2)
    b2_bd = jnp.tile(b2, (1, F))         # (1, F*A1)

    rows_per_block = bg * Np
    grid = (num_groups // bg,)

    kernel = functools.partial(attention_kernel,
                               rows_per_graph=Np, real_rows=N)

    out = pl.pallas_call(
        kernel,
        out_shape=jax.ShapeDtypeStruct((num_groups * Np, width), dtype),
        grid_spec=pltpu.PrefetchScalarGridSpec(
            num_scalar_prefetch=0,
            grid=grid,
            in_specs=[
                # Activations stream block-by-block (lane-dense, large blocks).
                pl.BlockSpec((rows_per_block, width), lambda i: (i, 0)),
                # Weights / biases: constant index_map -> resident in VMEM.
                pl.BlockSpec((width, hidden), lambda i: (0, 0)),
                pl.BlockSpec((1, hidden), lambda i: (0, 0)),
                pl.BlockSpec((hidden, width), lambda i: (0, 0)),
                pl.BlockSpec((1, width), lambda i: (0, 0)),
            ],
            out_specs=pl.BlockSpec((rows_per_block, width), lambda i: (i, 0)),
        ),
        compiler_params=pltpu.CompilerParams(
            # Grid steps are independent -> shard across both TCs on v7x.
            dimension_semantics=("parallel",),
            # Explicit scoped-VMEM budget; fits all generations (v7x: 64 MiB).
            vmem_limit_bytes=32 * 1024 * 1024,
        ),
    )(x_fold, w1_bd, b1_bd, w2_bd, b2_bd)

    # Unfold: (G*Np, F*A1) -> (G, Np, F, A1) -> (G, F, Np, A1) -> (G*F, Np, A1).
    out = (out.reshape(num_groups, Np, F, A1)
              .transpose(0, 2, 1, 3)
              .reshape(num_groups * F, Np, A1))
    return out[:B, :N, :]


def init_params(key, attention_size_1, attention_size_2):
    """Deterministic init mirroring torch.nn.Linear's U(-1/sqrt(fan_in), ...)."""
    k1, k2, k3, k4 = jax.random.split(key, 4)
    bound1 = 1.0 / jnp.sqrt(attention_size_1)
    bound2 = 1.0 / jnp.sqrt(attention_size_2)
    # Stored already transposed: (in_features, out_features)
    w1 = jax.random.uniform(k1, (attention_size_1, attention_size_2),
                            jnp.float32, -bound1, bound1)
    b1 = jax.random.uniform(k2, (1, attention_size_2), jnp.float32, -bound1, bound1)
    w2 = jax.random.uniform(k3, (attention_size_2, attention_size_1),
                            jnp.float32, -bound2, bound2)
    b2 = jax.random.uniform(k4, (1, attention_size_1), jnp.float32, -bound2, bound2)
    return w1, b1, w2, b2


def attention_ref(x, w1, b1, w2, b2):
    """Pure-JAX reference of the PyTorch forward, batched over the leading axis.

    softmax over axis=1 here == per-instance softmax over dim=0.
    """
    h = jax.nn.relu(x @ w1 + b1)
    s = h @ w2 + b2
    att = jax.nn.softmax(s, axis=1)
    return x * att


if __name__ == "__main__":
    attention_size_1 = 32   # input / output feature dim (A1)
    attention_size_2 = 16   # hidden attention dim (A2)
    n_capsules = 8          # rows per instance (softmax axis)
    batch = 16              # number of independent attention instances

    key = jax.random.PRNGKey(0)
    kx, kp, kx2 = jax.random.split(key, 3)
    x = jax.random.normal(kx, (batch, n_capsules, attention_size_1), jnp.float32)
    w1, b1, w2, b2 = init_params(kp, attention_size_1, attention_size_2)

    ref = attention_ref(x, w1, b1, w2, b2)
    out = attention_forward(x, w1, b1, w2, b2)
    out = jax.block_until_ready(out)
    assert out.shape == (batch, n_capsules, attention_size_1)
    # approx=True softmax-denominator reciprocal -> slightly relaxed tolerance.
    assert jnp.allclose(out, ref, atol=5e-3, rtol=5e-3)

    # Ragged case: N not a multiple of 8 and B not a multiple of the lane fold
    # (exercises capsule-axis padding + in-kernel softmax masking + batch pad).
    x_odd = jax.random.normal(kx2, (3, 5, attention_size_1), jnp.float32)
    ref_odd = attention_ref(x_odd, w1, b1, w2, b2)
    out_odd = attention_forward(x_odd, w1, b1, w2, b2)
    out_odd = jax.block_until_ready(out_odd)
    assert out_odd.shape == x_odd.shape
    assert jnp.allclose(out_odd, ref_odd, atol=5e-3, rtol=5e-3)

    print("KERNEL_OK")
</pallas_src>

<mosaic_0001>
module attributes {stable_mosaic.version = 11 : i64} {
  func.func @attention_kernel(%arg0: i32, %arg1: memref<16x128xf32, #tpu.memory_space<vmem>>, %arg2: memref<128x64xf32, #tpu.memory_space<vmem>>, %arg3: memref<1x64xf32, #tpu.memory_space<vmem>>, %arg4: memref<64x128xf32, #tpu.memory_space<vmem>>, %arg5: memref<1x128xf32, #tpu.memory_space<vmem>>, %arg6: memref<16x128xf32, #tpu.memory_space<vmem>>) attributes {dimension_semantics = [#tpu.dimension_semantics<parallel>], iteration_bounds = array<i64: 2>, scalar_prefetch = 0 : i64, scratch_operands = 0 : i64, tpu.core_type = #tpu.core_type<tc>, window_params = [{transform_indices = @transform_0, window_bounds = array<i64: 16, 128>}, {pipeline_mode = #tpu.pipeline_mode<synchronous>, transform_indices = @transform_1, window_bounds = array<i64: 128, 64>}, {pipeline_mode = #tpu.pipeline_mode<synchronous>, transform_indices = @transform_2, window_bounds = array<i64: 1, 64>}, {pipeline_mode = #tpu.pipeline_mode<synchronous>, transform_indices = @transform_3, window_bounds = array<i64: 64, 128>}, {pipeline_mode = #tpu.pipeline_mode<synchronous>, transform_indices = @transform_4, window_bounds = array<i64: 1, 128>}, {transform_indices = @transform_5, window_bounds = array<i64: 16, 128>}]} {
    %c0 = arith.constant 0 : index
    %c0_0 = arith.constant 0 : index
    %0 = vector.load %arg1[%c0, %c0_0] : memref<16x128xf32, #tpu.memory_space<vmem>>, vector<16x128xf32>
    %c0_1 = arith.constant 0 : index
    %c0_2 = arith.constant 0 : index
    %1 = vector.load %arg2[%c0_1, %c0_2] : memref<128x64xf32, #tpu.memory_space<vmem>>, vector<128x64xf32>
    %cst = arith.constant dense<0.000000e+00> : vector<16x64xf32>
    %2 = tpu.matmul %0, %1, %cst {dimension_numbers = #tpu.dot_dimension_numbers<[1], [0], [0], [1], [0, 0, 1, 1], [], []>} : vector<16x128xf32>, vector<128x64xf32>, vector<16x64xf32> -> vector<16x64xf32>
    %c0_3 = arith.constant 0 : index
    %c0_4 = arith.constant 0 : index
    %3 = vector.load %arg3[%c0_3, %c0_4] : memref<1x64xf32, #tpu.memory_space<vmem>>, vector<1x64xf32>
    %4 = vector.broadcast %3 : vector<1x64xf32> to vector<16x64xf32>
    %5 = arith.addf %2, %4 : vector<16x64xf32>
    %cst_5 = arith.constant 0.000000e+00 : f32
    %6 = vector.broadcast %cst_5 : f32 to vector<16x64xf32>
    %7 = arith.maximumf %5, %6 : vector<16x64xf32>
    %c0_6 = arith.constant 0 : index
    %c0_7 = arith.constant 0 : index
    %8 = vector.load %arg4[%c0_6, %c0_7] : memref<64x128xf32, #tpu.memory_space<vmem>>, vector<64x128xf32>
    %cst_8 = arith.constant dense<0.000000e+00> : vector<16x128xf32>
    %9 = tpu.matmul %7, %8, %cst_8 {dimension_numbers = #tpu.dot_dimension_numbers<[1], [0], [0], [1], [0, 0, 1, 1], [], []>} : vector<16x64xf32>, vector<64x128xf32>, vector<16x128xf32> -> vector<16x128xf32>
    %c0_9 = arith.constant 0 : index
    %c0_10 = arith.constant 0 : index
    %10 = vector.load %arg5[%c0_9, %c0_10] : memref<1x128xf32, #tpu.memory_space<vmem>>, vector<1x128xf32>
    %11 = vector.broadcast %10 : vector<1x128xf32> to vector<16x128xf32>
    %12 = arith.addf %9, %11 : vector<16x128xf32>
    %13 = vector.shape_cast %12 : vector<16x128xf32> to vector<2x8x128xf32>
    %14 = vector.shape_cast %0 : vector<16x128xf32> to vector<2x8x128xf32>
    %cst_11 = arith.constant dense<0xFF800000> : vector<2x128xf32>
    %15 = vector.multi_reduction <maximumf>, %13, %cst_11 [1] : vector<2x8x128xf32> to vector<2x128xf32>
    %16 = vector.shape_cast %15 : vector<2x128xf32> to vector<2x1x128xf32>
    %17 = vector.broadcast %16 : vector<2x1x128xf32> to vector<2x8x128xf32>
    %18 = arith.subf %13, %17 : vector<2x8x128xf32>
    %19 = math.exp %18 : vector<2x8x128xf32>
    %cst_12 = arith.constant dense<0.000000e+00> : vector<2x128xf32>
    %20 = vector.multi_reduction <add>, %19, %cst_12 [1] : vector<2x8x128xf32> to vector<2x128xf32>
    %21 = vector.shape_cast %20 : vector<2x128xf32> to vector<2x1x128xf32>
    %22 = tpu.reciprocal %21 {approx = true} : vector<2x1x128xf32> -> vector<2x1x128xf32>
    %23 = arith.mulf %14, %19 : vector<2x8x128xf32>
    %24 = vector.broadcast %22 : vector<2x1x128xf32> to vector<2x8x128xf32>
    %25 = arith.mulf %23, %24 : vector<2x8x128xf32>
    %26 = vector.shape_cast %25 : vector<2x8x128xf32> to vector<16x128xf32>
    %c0_13 = arith.constant 0 : index
    %c0_14 = arith.constant 0 : index
    %27 = vector.load %arg6[%c0_13, %c0_14] : memref<16x128xf32, #tpu.memory_space<vmem>>, vector<16x128xf32>
    tpu.vector_store %arg6[%c0_13, %c0_14], %26 {strides = array<i32>} : memref<16x128xf32, #tpu.memory_space<vmem>>, vector<16x128xf32>,
    return
  }
  func.func @transform_0(%arg0: i32) -> (i32, i32) {
    %c0_i32 = arith.constant 0 : i32
    %c0_i32_0 = arith.constant 0 : i32
    return %arg0, %c0_i32 : i32, i32
  }
  func.func @transform_1(%arg0: i32) -> (i32, i32) {
    %c0_i32 = arith.constant 0 : i32
    %c0_i32_0 = arith.constant 0 : i32
    %c0_i32_1 = arith.constant 0 : i32
    return %c0_i32, %c0_i32_0 : i32, i32
  }
  func.func @transform_2(%arg0: i32) -> (i32, i32) {
    %c0_i32 = arith.constant 0 : i32
    %c0_i32_0 = arith.constant 0 : i32
    %c0_i32_1 = arith.constant 0 : i32
    return %c0_i32, %c0_i32_0 : i32, i32
  }
  func.func @transform_3(%arg0: i32) -> (i32, i32) {
    %c0_i32 = arith.constant 0 : i32
    %c0_i32_0 = arith.constant 0 : i32
    %c0_i32_1 = arith.constant 0 : i32
    return %c0_i32, %c0_i32_0 : i32, i32
  }
  func.func @transform_4(%arg0: i32) -> (i32, i32) {
    %c0_i32 = arith.constant 0 : i32
    %c0_i32_0 = arith.constant 0 : i32
    %c0_i32_1 = arith.constant 0 : i32
    return %c0_i32, %c0_i32_0 : i32, i32
  }
  func.func @transform_5(%arg0: i32) -> (i32, i32) {
    %c0_i32 = arith.constant 0 : i32
    %c0_i32_0 = arith.constant 0 : i32
    return %arg0, %c0_i32 : i32, i32
  }
}

</mosaic_0001>

<bundles_post_ra>
// kernel: tpu_custom_call.1
= control target key start
LH: loop header
LB: loop body
LE: loop exit
PB: predicated region body
PF: predicated region fallthrough
CT: control target
= control target key end

     0   :  { %10 = vsyncpa [#allocation3], 0  ;;  %s775_s0 = inlined_call_operand.vmem [shape: f32[32,128], index: 0, kind: input, shape index: {}]   ;;  %s776_s1 = inlined_call_operand.vmem [shape: f32[128,64], index: 1, kind: input, shape index: {}]   ;;  %s777_s2 = inlined_call_operand.vmem [shape: f32[1,64], index: 2, kind: input, shape index: {}]   ;;  %s778_s3 = inlined_call_operand.vmem [shape: f32[64,128], index: 3, kind: input, shape index: {}]   ;;  %s779_s4 = inlined_call_operand.vmem [shape: f32[1,128], index: 4, kind: input, shape index: {}]   ;;  %s780_s5 = inlined_call_operand.hbm [shape: f32[32,128], index: 5, kind: output, shape index: {}]  }
   0x1   :  { %12 = vsyncpa [#allocation3 + $0x1], 0  ;;  %s609_s18 = smov 0   ;;  %s611_s19 = smov 0  }
   0x2   :  { %s613_s20 = smov 0   ;;  %s615_s21 = smov 0  }
   0x3 LB: > { %s630_s22 = sadd.s32 4294967295, %s575_s21   ;;  %s431_s23 = sadd.s32 4294967294, %s575_s21   ;;  %s575_s21 = sphi %s615_s21, %s786_s21   ;;  %s571_s20 = sphi %s613_s20, %s785_s20   ;;  %s567_s19 = sphi %s611_s19, %s784_s19   ;;  %s563_s18 = sphi %s609_s18, %s783_s18  }
   0x4   : > { %s634_s24 = sadd.s32 1, %s575_s21   ;;  %s135_s25 = sadd.s32 1, %s571_s20 }
   0x5   : > { %s132_s26 = ssub.s32 %s575_s21, %s634_s24  ;;  %p145_p0 = scmp.ne.s32.totalorder %s571_s20, %s567_s19 }
   0x6   : > { %p133_p1 = scmp.eq.s32.totalorder %s132_s26, 0  ;;  %p146_p2 = scmp.eq.s32.totalorder %s630_s22, 1 }
   0x7   : > { %p151_p3 = scmp.ne.s32.totalorder %s567_s19, %s563_s18  ;;  %p152_p4 = scmp.eq.s32.totalorder %s431_s23, 1 }
   0x8   : > { %s645_s27 = scalar_select %p133_p1, %s571_s20, %s135_s25  }
   0x9   : > { %p647_p5 = por %p146_p2, %p145_p0  ;;  %p651_p6 = por %p152_p4, %p151_p3 }
   0xa   : > { %p434_p7 = scmp.ge.s32.totalorder %s575_s21, 1  ;;  %p191_p8 = scmp.lt.s32.totalorder %s575_s21, 3 }
   0xc   : > { %p192_p9 = pnand %p434_p7, %p191_p8 }
   0xd   : > { %s436_s15 = sshll.u32 (!%p192_p9), %s630_s22, 1  ;;  %s216_s14 = sand.u32 (!%p192_p9), 1, %s567_s19  }
   0xe   : > { %195 = sbr.rel (%p192_p9) target bundleno = 365 (0x16d), region = 40  ;;  %p220_p10 = scmp.lt.s32.totalorder (!%p192_p9), %s436_s15, 3 }
   0xf   : > { %s435_s16 = sshll.u32 (!%p192_p9), %s216_s14, 4  ;;  %s445_s17 = sshll.u32 (!%p192_p9), %s630_s22, 4 }
  0x10   : > { %s365_s26 = scalar_lea.hbm (!%p192_p9), %s780_s5, %s445_s17  ;;  %s354_s22 = scalar_lea.sflag (!%p192_p9), [#allocation3], %s216_s14 }
  0x11   : > { %s368_s6 = sshll.u32 (!%p192_p9), %s365_s26, 4  ;;  %s533_s11 = scalar_lea.hbm (!%p192_p9), %s780_s5, 32  ;;  %s369_s6 = int_to_ptr.hbm [resolvable:$true] %s368_s6 }
  0x12   : > { %s527_s7 = sshra.s32 (!%p192_p9), %s369_s6, 4  ;;  %s528_s7 = int_to_ptr.hbm [resolvable:$true] %s527_s7 }
  0x13   : > { %v243_v0 = vld [vmem:[%s776_s1 + $0x78] sm:$0xff]  ;;  %v242_v1 = vld [vmem:[%s776_s1 + $0x70] sm:$0xff]  ;;  %v241_v2 = vld [vmem:[%s776_s1 + $0x68] sm:$0xff]  ;;  %s788_s15 = smov (!%p220_p10, %s436_s15), 3  ;;  %vm285_vm0 = vcmask 523264   ;;  %s529_s8 = scalar_lea.hbm %s528_s7, 16 }
  0x14   : > { %248 = vmatpush.msra.mxu0 %v243_v0  ;;  %446 = vmatpush.msra.mxu2 %v243_v0  ;;  %v240_v3 = vld [vmem:[%s776_s1 + $0x60] sm:$0xff]  ;;  %v280_v4 = vld [vmem:[%s778_s3 + $0x38] sm:$0xff]  ;;  %v279_v5 = vld [vmem:[%s778_s3 + $0x30] sm:$0xff]  ;;  %s437_s10 = sshll.u32 %s788_s15, 3  ;;  %s218_s15 = scalar_lea.vmem [#allocation2], %s435_s16 }
  0x15   : > { %v239_v6 = vld [vmem:[%s776_s1 + $0x58] sm:$0xff]  ;;  %300 = vmatpush.msra.mxu1 %v280_v4  ;;  %v278_v7 = vld [vmem:[%s778_s3 + $0x28] sm:$0xff]  ;;  %v238_v8 = vld [vmem:[%s776_s1 + $0x50] sm:$0xff]  ;;  %s223_s23 = scalar_lea.vmem %s775_s0, %s437_s10  ;;  %s366_s30 = sshll.u32 %s218_s15, 4  ;;  %s367_s30 = int_to_ptr.vmem [resolvable:$true] %s366_s30 }
  0x16   : > { %249 = vmatpush.msra.mxu0 %v242_v1  ;;  %447 = vmatpush.msra.mxu2 %v242_v1  ;;  %v277_v9 = vld [vmem:[%s778_s3 + $0x20] sm:$0xff]  ;;  %v237_v10 = vld [vmem:[%s776_s1 + $0x48] sm:$0xff]  ;;  %v276_v11 = vld [vmem:[%s778_s3 + $0x18] sm:$0xff]  ;;  %p530_p11 = scmp.ne.s32.totalorder %s528_s7, %s529_s8  ;;  %p534_p0 = scmp.lt.s32.totalorder %s528_s7, %s780_s5 }
  0x17   : > { %301 = vmatpush.msra.mxu1 %v279_v5  ;;  %v236_v12 = vld [vmem:[%s776_s1 + $0x40] sm:$0xff]  ;;  %v235_v13 = vld [vmem:[%s776_s1 + $0x38] sm:$0xff]  ;;  %v234_v14 = vld [vmem:[%s776_s1 + $0x30] sm:$0xff]  ;;  %p535_p1 = scmp.lt.s32.totalorder %s533_s11, %s529_s8 }
  0x18   : > { %250 = vmatpush.msra.mxu0 %v241_v2  ;;  %448 = vmatpush.msra.mxu2 %v241_v2  ;;  %v233_v15 = vld [vmem:[%s776_s1 + $0x28] sm:$0xff]  ;;  %v232_v16 = vld [vmem:[%s776_s1 + $0x20] sm:$0xff]  ;;  %v231_v17 = vld [vmem:[%s776_s1 + $0x18] sm:$0xff]  ;;  %p531_p12 = pnand %p530_p11, %p647_p5 }
  0x19   : > { %302 = vmatpush.msra.mxu1 %v278_v7  ;;  %v230_v18 = vld [vmem:[%s776_s1 + $0x10] sm:$0xff]  ;;  %v229_v19 = vld [vmem:[%s776_s1 + $0x8] sm:$0xff]  ;;  %v228_v20 = vld [vmem:[%s776_s1] sm:$0xff]  ;;  %p536_p2 = por %p535_p1, %p534_p0 }
  0x1a   : > { %251 = vmatpush.msra.mxu0 %v240_v3  ;;  %449 = vmatpush.msra.mxu2 %v240_v3  ;;  %v226_v21 = vld [vmem:[%s223_s23] sm:$0xff]  ;;  %v724_v22 = vld [vmem:[%s223_s23 + $0x8] sm:$0xff]  ;;  %v275_v23 = vld [vmem:[%s778_s3 + $0x10] sm:$0xff]  ;;  %p532_p13 = pneg %p531_p12 }
  0x1b   : > { %303 = vmatpush.msra.mxu1 %v277_v9  ;;  %v274_v24 = vld [vmem:[%s778_s3 + $0x8] sm:$0xff]  ;;  %v273_v25 = vld [vmem:[%s778_s3] sm:$0xff] }
  0x1c   : > { %252 = vmatpush.msra.mxu0 %v239_v6  ;;  %450 = vmatpush.msra.mxu2 %v239_v6  ;;  %v503_v26 = vld [vmem:[%s777_s2] ss:$0 sm:$0xff]  ;;  %p537_p3 = pnand %p536_p2, %p532_p13 }
  0x1d   : > { %304 = vmatpush.msra.mxu1 %v276_v11  ;;  %v504_v33 = vld [vmem:[%s779_s4] ss:$0 sm:$0xff] }
  0x1e   : > { %253 = vmatpush.msra.mxu0 %v238_v8  ;;  %451 = vmatpush.msra.mxu2 %v238_v8 }
  0x1f   : > { %305 = vmatpush.msra.mxu1 %v275_v23 }
  0x20   : > { %254 = vmatpush.msra.mxu0 %v237_v10  ;;  %452 = vmatpush.msra.mxu2 %v237_v10 }
  0x21   : > { %306 = vmatpush.msra.mxu1 %v274_v24 }
  0x22   : > { %255 = vmatpush.msra.mxu0 %v236_v12  ;;  %453 = vmatpush.msra.mxu2 %v236_v12 }
  0x23   : > { %307 = vmatpush.msra.mxu1 %v273_v25 }
  0x24   : > { %256 = vmatpush.msra.mxu0 %v235_v13  ;;  %454 = vmatpush.msra.mxu2 %v235_v13 }
  0x26   : > { %257 = vmatpush.msra.mxu0 %v234_v14  ;;  %455 = vmatpush.msra.mxu2 %v234_v14 }
  0x28   : > { %258 = vmatpush.msra.mxu0 %v233_v15  ;;  %456 = vmatpush.msra.mxu2 %v233_v15 }
  0x2a   : > { %259 = vmatpush.msra.mxu0 %v232_v16  ;;  %457 = vmatpush.msra.mxu2 %v232_v16 }
  0x2c   : > { %260 = vmatpush.msra.mxu0 %v231_v17  ;;  %458 = vmatpush.msra.mxu2 %v231_v17 }
  0x2e   : > { %261 = vmatpush.msra.mxu0 %v230_v18  ;;  %459 = vmatpush.msra.mxu2 %v230_v18 }
  0x30   : > { %262 = vmatpush.msra.mxu0 %v229_v19  ;;  %460 = vmatpush.msra.mxu2 %v229_v19 }
  0x32   : > { %263 = vmatpush.msra.mxu0 %v228_v20  ;;  %461 = vmatpush.msra.mxu2 %v228_v20 }
  0x33   : > { %264 = vmatmul.f32.vlgmr.msra.gmra.mxu0 %v226_v21  ;;  %267 = vmatmul.f32.vlgmr.msra.gmra.mxu2 %v724_v22 }
  0xb0   : > { %v265_v27 = vpop.f32.mrf.mxu0 }
  0xb1   : > { %v266_v28 = vadd.f32 %v503_v26, %v265_v27 }
  0xb3   : > { %v271_v29 = vmax.f32 %v266_v28, 0.0 }
  0xb5   : > { %438 = vmatmul.msk.f32.vlgmr.msra.gmra.mxu1 %vm285_vm0, %v271_v29 }
  0xb6   : > { %v268_v30 = vpop.f32.mrf.mxu2 }
  0xb7   : > { %v269_v31 = vadd.f32 %v503_v26, %v268_v30 }
  0xb9   : > { %v272_v32 = vmax.f32 %v269_v31, 0.0 }
  0xbd   : > { %439 = vmatmul.msk.f32.gmra.mxu1 %vm285_vm0, %v272_v32 }
 0x132   : > { %v309_v34 = vpop.f32.mrf.mxu1 }
 0x133   : > { %v310_v35 = vadd.f32 %v504_v33, %v309_v34 }
 0x135   : > { %v315_v36 = vrot.slane %v310_v35, 4 }
 0x137   : > { %v316_v37 = vmax.f32 %v310_v35, %v315_v36 }
 0x139   : > { %v317_v38 = vrot.slane %v316_v37, 2 }
 0x13a   : > { %v312_v39 = vpop.f32.mrf.mxu1 }
 0x13b   : > { %v318_v40 = vmax.f32 %v316_v37, %v317_v38  ;;  %v313_v41 = vadd.f32 %v504_v33, %v312_v39 }
 0x13d   : > { %v319_v42 = vrot.slane %v318_v40, 1  ;;  %v321_v43 = vrot.slane %v313_v41, 4 }
 0x13f   : > { %v320_v44 = vmax.f32 %v318_v40, %v319_v42  ;;  %v322_v45 = vmax.f32 %v313_v41, %v321_v43 }
 0x141   : > { %v327_v46 = vsub.f32 %v310_v35, %v320_v44  ;;  %v323_v47 = vrot.slane %v322_v45, 2 }
 0x143   : > { %v329_v48 = vmul.f32 1.442695, %v327_v46  ;;  %v324_v49 = vmax.f32 %v322_v45, %v323_v47 }
 0x145   : > { %505 = vpow2.f32 %v329_v48  ;;  %v325_v50 = vrot.slane %v324_v49, 1 }
 0x147   : > { %v326_v51 = vmax.f32 %v324_v49, %v325_v50 }
 0x149   : > { %v328_v52 = vsub.f32 %v313_v41, %v326_v51 }
 0x14b   : > { %v506_v53 = vpop.eup %505  ;;  %v331_v54 = vmul.f32 1.442695, %v328_v52 }
 0x14c   : > { %v333_v55 = vrot.slane %v506_v53, 4  ;;  %v347_v3 = vmul.f32 %v506_v53, %v226_v21 }
 0x14d   : > { %507 = vpow2.f32 %v331_v54 }
 0x14e   : > { %v334_v56 = vadd.f32 %v506_v53, %v333_v55 }
 0x150   : > { %v335_v57 = vrot.slane %v334_v56, 2 }
 0x152   : > { %v336_v58 = vadd.f32 %v335_v57, %v334_v56 }
 0x153   : > { %v508_v59 = vpop.eup %507 }
 0x154   : > { %v339_v60 = vrot.slane %v508_v59, 4  ;;  %v337_v61 = vrot.slane %v336_v58, 1  ;;  %v348_v7 = vmul.f32 %v508_v59, %v724_v22 }
 0x156   : > { %v340_v62 = vadd.f32 %v508_v59, %v339_v60  ;;  %v338_v63 = vadd.f32 %v337_v61, %v336_v58 }
 0x158   : > { %v341_v0 = vrot.slane %v340_v62, 2  ;;  %509 = vrcp.f32 %v338_v63 }
 0x15a   : > { %v342_v1 = vadd.f32 %v341_v0, %v340_v62 }
 0x15c   : > { %v343_v2 = vrot.slane %v342_v1, 1 }
 0x15e   : > { %v510_v4 = vpop.eup %509  ;;  %v344_v5 = vadd.f32 %v343_v2, %v342_v1 }
 0x15f   : > { %v349_v6 = vmul.f32 %v510_v4, %v347_v3 }
 0x160   : > { %511 = vrcp.f32 %v344_v5 }
 0x161   : > { %351 = vst [vmem:[%s218_s15] sm:$0xff] %v349_v6 }
 0x166   : > { %v512_v8 = vpop.eup %511 }
 0x167   : > { %v350_v9 = vmul.f32 %v512_v8, %v348_v7 }
 0x169   : > { %352 = vst [vmem:[%s218_s15 + $0x8] sm:$0xff] %v350_v9 }
 0x16a   : > { %540 = shalt.err (!%p537_p3)
}
 0x16b   : > { %s577_s14 = smov 128   ;;  %s578_s16 = smov 8  }
 0x16c   : > { %462 = dma.vmem_to_hbm [thread:$0]  (%p647_p5), %s367_s30, 256, %s369_s6, %s354_s22, %s577_s14, %s577_s14, %s578_s16  }
 0x16d PF: > { %p468_p4 = scmp.ge.s32.totalorder %s575_s21, 2  ;;  %s383_s17 = sand.u32 1, %s563_s18  }
 0x16e   : > { %s384_s23 = scalar_lea.sflag [#allocation3], %s383_s17 }
 0x16f   : > { %p465_p7 = pnand %p468_p4, %p651_p6 }
 0x171   : > { %p466_p8 = pneg %p465_p7 }
 0x173   : > { %558 = dma.done.wait (%p466_p8), %s384_s23, 256  }
 0x174   : > { %560 = vsyncadd (%p466_p8), %s384_s23, 4294967040  ;;  %p15_p9 = scmp.ge.s32.totalorder %s634_s24, 4   ;;  %s783_s18 = smov %s567_s19 }
 0x175   : > { %s784_s19 = smov %s571_s20  ;;  %s785_s20 = smov %s645_s27 }
 0x176   : > { %s786_s21 = smov %s634_s24  ;;  %17 = sbr.rel (!%p15_p9) target bundleno = 3 (0x3), region = 75 }
 0x17b   :  { %390 = vsyncpa [#allocation3], 1 }
 0x17c   :  { %392 = vsyncpa [#allocation3 + $0x1], 1 }

</bundles_post_ra>
